<compile_context>
chip_gen: v5e
topology: v5e:2x2
jax: 0.10.0
libtpu: 0.0.40
codegen_flags: <defaults>
</compile_context>

<pallas_src>
import functools
import math

import jax
import jax.numpy as jnp
from jax.experimental import pallas as pl
from jax.experimental.pallas import tpu as pltpu


# Finite "minus infinity" so all-masked rows stay NaN-free under online softmax.
MASK_VALUE = -0.7 * float(jnp.finfo(jnp.float32).max)


def _qkv_proj_kernel(x_ref, w_ref, q_ref, k_ref, v_ref, *, d_p):
    """Single fused projection: x @ [Wq*scale | Wk | Wv] -> q, k, v tiles."""
    x = x_ref[0]                                              # (tq, d_in_p)
    qkv = jnp.dot(x, w_ref[...], preferred_element_type=jnp.float32)
    # Static, 128-aligned lane slices of the (tq, 3*d_p) result.
    q_ref[0] = qkv[:, :d_p].astype(q_ref.dtype)
    k_ref[0] = qkv[:, d_p:2 * d_p].astype(k_ref.dtype)
    v_ref[0] = qkv[:, 2 * d_p:].astype(v_ref.dtype)


def _flash_kernel(q_ref, k_ref, v_ref, o_ref, m_sc, l_sc, acc_sc, *, tq, tk):
    qi = pl.program_id(1)
    ki = pl.program_id(2)
    nk = pl.num_programs(2)

    @pl.when(ki == 0)
    def _init():
        m_sc[...] = jnp.full_like(m_sc, MASK_VALUE)
        l_sc[...] = jnp.zeros_like(l_sc)
        acc_sc[...] = jnp.zeros_like(acc_sc)

    q_start = qi * tq
    k_start = ki * tk
    block_needed = k_start < q_start + tq      # block has any j <= i entries
    needs_mask = k_start + tk > q_start + 1    # block has any j > i entries

    def _online_update(s):
        m_prev = m_sc[...]
        m_new = jnp.maximum(m_prev, jnp.max(s, axis=-1, keepdims=True))
        alpha = jnp.exp(m_prev - m_new)
        p = jnp.exp(s - m_new)
        l_sc[...] = alpha * l_sc[...] + jnp.sum(p, axis=-1, keepdims=True)
        acc_sc[...] = alpha * acc_sc[...] + jnp.dot(
            p.astype(v_ref.dtype), v_ref[0],
            preferred_element_type=jnp.float32)
        m_sc[...] = m_new

    @pl.when(block_needed)
    def _compute():
        # QK^T without an explicit k.T: contract the last dims directly.
        s = jax.lax.dot_general(
            q_ref[0], k_ref[0],
            dimension_numbers=(((1,), (1,)), ((), ())),
            preferred_element_type=jnp.float32)               # (tq, tk)

        @pl.when(needs_mask)               # diagonal block: apply causal mask
        def _():
            row = q_start + jax.lax.broadcasted_iota(jnp.int32, (tq, tk), 0)
            col = k_start + jax.lax.broadcasted_iota(jnp.int32, (tq, tk), 1)
            _online_update(jnp.where(col > row, MASK_VALUE, s))

        @pl.when(jnp.logical_not(needs_mask))    # strictly below the diagonal
        def _():
            _online_update(s)

    @pl.when(ki == nk - 1)
    def _finalize():
        # Exact reciprocal: only tq divides per q tile (the approximate EUP
        # reciprocal injected ~3e-3 relative error into every output row).
        inv_l = 1.0 / l_sc[...]
        o_ref[0] = (acc_sc[...] * inv_l).astype(o_ref.dtype)


def _round_up(x, m):
    return ((x + m - 1) // m) * m


def causal_attention(x, wq, wk, wv, *, tq=256, tk=256, qkv_dtype=jnp.bfloat16):
    """x: (B, T, d_in); wq/wk/wv: (d_in, d_out) (= nn.Linear weight transposed).

    Returns (B, T, d_out) in x.dtype.
      tq/tk       : q / kv sequence tile sizes (multiples of 128; tune per TPU
                    generation: 256/256 good for v6e/v7x, 128..256 for v5e).
      qkv_dtype   : dtype of the q/k/v intermediates (bf16 default for full-rate
                    MXU + half HBM traffic; pass jnp.float32 or None=x.dtype for
                    maximum accuracy). Softmax state / accumulation is always f32.
    """
    B, T, d_in = x.shape
    d_out = wq.shape[1]
    if qkv_dtype is None:
        qkv_dtype = x.dtype
    # Literal ** 0.05 from the source module (likely a typo for 0.5).
    scale = 1.0 / (float(d_out) ** 0.05)

    # Lane-dense / MXU-aligned padding of head dims; tile-aligned sequence.
    d_in_p = _round_up(d_in, 128)
    d_p = _round_up(d_out, 128)
    # Clamp tiles for short sequences so t_p padding does not blow up.
    t_align = _round_up(T, 128)
    tq = min(tq, t_align)
    tk = min(tk, t_align)
    t_p = _round_up(T, math.lcm(tq, tk))

    dtype = x.dtype
    xp = jnp.pad(x, ((0, 0), (0, t_p - T), (0, d_in_p - d_in)))

    # Host-side weight prep: fold the softmax scale into Wq and fuse the three
    # projections into one (d_in_p, 3*d_p) weight.  Zero padding is exact.
    def _pad_w(w):
        return jnp.pad(w.astype(dtype), ((0, d_in_p - d_in), (0, d_p - d_out)))

    w_cat = jnp.concatenate(
        [_pad_w(wq * scale), _pad_w(wk), _pad_w(wv)], axis=1)   # (d_in_p, 3*d_p)

    # --- 1) Fused QKV projection: each x tile is projected exactly once. ---
    q, k, v = pl.pallas_call(
        functools.partial(_qkv_proj_kernel, d_p=d_p),
        out_shape=tuple(jax.ShapeDtypeStruct((B, t_p, d_p), qkv_dtype)
                        for _ in range(3)),
        grid_spec=pltpu.PrefetchScalarGridSpec(
            num_scalar_prefetch=0,
            grid=(B, t_p // tq),
            in_specs=[
                pl.BlockSpec((1, tq, d_in_p), lambda b, i: (b, i, 0)),
                pl.BlockSpec((d_in_p, 3 * d_p), lambda b, i: (0, 0)),
            ],
            out_specs=[
                pl.BlockSpec((1, tq, d_p), lambda b, i: (b, i, 0)),
                pl.BlockSpec((1, tq, d_p), lambda b, i: (b, i, 0)),
                pl.BlockSpec((1, tq, d_p), lambda b, i: (b, i, 0)),
            ],
        ),
        compiler_params=pltpu.CompilerParams(
            dimension_semantics=("parallel", "parallel")),
    )(xp, w_cat)

    # --- 2) Flash attention: online softmax + causal block skipping. ---
    # k/v index maps clamp the kv block index to the last block the causal mask
    # can reach for this q tile: above-diagonal grid steps repeat the previous
    # block index, so their k/v DMA is skipped (compute is gated by pl.when).
    def _kv_index(b, qi, ki):
        last_needed = (qi * tq + tq - 1) // tk
        return (b, jnp.minimum(ki, last_needed), 0)

    out = pl.pallas_call(
        functools.partial(_flash_kernel, tq=tq, tk=tk),
        out_shape=jax.ShapeDtypeStruct((B, t_p, d_p), dtype),
        grid_spec=pltpu.PrefetchScalarGridSpec(
            num_scalar_prefetch=0,
            grid=(B, t_p // tq, t_p // tk),
            in_specs=[
                pl.BlockSpec((1, tq, d_p), lambda b, qi, ki: (b, qi, 0)),
                pl.BlockSpec((1, tk, d_p), _kv_index),
                pl.BlockSpec((1, tk, d_p), _kv_index),
            ],
            out_specs=pl.BlockSpec((1, tq, d_p), lambda b, qi, ki: (b, qi, 0)),
            scratch_shapes=[
                pltpu.VMEM((tq, 1), jnp.float32),     # running max m
                pltpu.VMEM((tq, 1), jnp.float32),     # running sum l
                pltpu.VMEM((tq, d_p), jnp.float32),   # output accumulator
            ],
        ),
        compiler_params=pltpu.CompilerParams(
            dimension_semantics=("parallel", "parallel", "arbitrary")),
    )(q, k, v)

    return out[:, :T, :d_out]


def reference_causal_attention(x, wq, wk, wv):
    """Pure-JAX reference mirroring the PyTorch forward (eval-mode dropout)."""
    q = x @ wq
    k = x @ wk
    v = x @ wv
    scores = jnp.einsum("btd,bsd->bts", q, k)
    T = x.shape[1]
    mask = jnp.triu(jnp.ones((T, T), dtype=bool), k=1)
    scores = jnp.where(mask[None, :, :], -jnp.inf, scores)
    attn = jax.nn.softmax(scores / (k.shape[-1] ** 0.05), axis=-1)
    return jnp.einsum("bts,bsd->btd", attn, v)


if __name__ == "__main__":
    # --- Case 1: the exact toy example from the source module. ---
    inputs = jnp.array(
        [[0.43, 0.15, 0.89],
         [0.55, 0.87, 0.66],
         [0.57, 0.85, 0.64],
         [0.22, 0.58, 0.33],
         [0.77, 0.25, 0.10],
         [0.05, 0.80, 0.55]], dtype=jnp.float32)
    x = jnp.stack([inputs, inputs], axis=0)          # (B=2, T=6, d_in=3)
    d_in, d_out = x.shape[-1], 2

    key = jax.random.PRNGKey(0)
    kq, kk, kv_ = jax.random.split(key, 3)
    # nn.Linear weight is (d_out, d_in); transpose to (d_in, d_out) for x @ W.
    wq = jax.random.uniform(kq, (d_out, d_in), dtype=jnp.float32).T
    wk = jax.random.uniform(kk, (d_out, d_in), dtype=jnp.float32).T
    wv = jax.random.uniform(kv_, (d_out, d_in), dtype=jnp.float32).T

    ref = reference_causal_attention(x, wq, wk, wv)

    # f32 intermediates: tight semantic check against the reference.
    out_f32 = jax.block_until_ready(
        causal_attention(x, wq, wk, wv, qkv_dtype=jnp.float32))
    assert out_f32.shape == (2, 6, d_out)
    assert jnp.allclose(out_f32, ref, atol=1e-4, rtol=1e-4), \
        float(jnp.max(jnp.abs(out_f32 - ref)))

    # Default (bf16 q/k/v) path: bf16-level sanity check.
    out_bf16 = jax.block_until_ready(causal_attention(x, wq, wk, wv))
    assert jnp.allclose(out_bf16, ref, atol=5e-2, rtol=5e-2), \
        float(jnp.max(jnp.abs(out_bf16 - ref)))

    # --- Case 2: tile-aligned shapes exercising the multi-block causal path
    # (DMA-clamped above-diagonal blocks, unmasked below-diagonal blocks,
    # masked diagonal blocks). ---
    B2, T2, din2, dout2 = 2, 512, 64, 128
    k1, k2, k3, k4 = jax.random.split(jax.random.PRNGKey(0), 4)
    x2 = jax.random.normal(k1, (B2, T2, din2), dtype=jnp.float32)
    wq2 = jax.random.normal(k2, (din2, dout2), jnp.float32) / din2
    wk2 = jax.random.normal(k3, (din2, dout2), jnp.float32) / din2
    wv2 = jax.random.normal(k4, (din2, dout2), jnp.float32) / din2
    ref2 = reference_causal_attention(x2, wq2, wk2, wv2)

    out2_f32 = jax.block_until_ready(
        causal_attention(x2, wq2, wk2, wv2, tq=256, tk=256,
                         qkv_dtype=jnp.float32))
    assert out2_f32.shape == (B2, T2, dout2)
    assert jnp.allclose(out2_f32, ref2, atol=1e-3, rtol=1e-3), \
        float(jnp.max(jnp.abs(out2_f32 - ref2)))

    out2_bf16 = jax.block_until_ready(
        causal_attention(x2, wq2, wk2, wv2, tq=256, tk=256))
    assert jnp.allclose(out2_bf16, ref2, atol=1e-2, rtol=1e-2), \
        float(jnp.max(jnp.abs(out2_bf16 - ref2)))

    # --- Case 3: non-tile-aligned T and non-128 d_out (padding paths). ---
    B3, T3, din3, dout3 = 1, 384, 64, 80
    k5, k6, k7, k8 = jax.random.split(jax.random.PRNGKey(1), 4)
    x3 = jax.random.normal(k5, (B3, T3, din3), dtype=jnp.float32)
    wq3 = jax.random.normal(k6, (din3, dout3), jnp.float32) / din3
    wk3 = jax.random.normal(k7, (din3, dout3), jnp.float32) / din3
    wv3 = jax.random.normal(k8, (din3, dout3), jnp.float32) / din3
    ref3 = reference_causal_attention(x3, wq3, wk3, wv3)

    out3 = jax.block_until_ready(
        causal_attention(x3, wq3, wk3, wv3, tq=256, tk=256,
                         qkv_dtype=jnp.float32))
    assert out3.shape == (B3, T3, dout3)
    assert jnp.allclose(out3, ref3, atol=1e-3, rtol=1e-3), \
        float(jnp.max(jnp.abs(out3 - ref3)))

    print("KERNEL_OK")
</pallas_src>

<mosaic_0001>
module attributes {stable_mosaic.version = 11 : i64} {
  func.func @_qkv_proj_kernel(%arg0: i32, %arg1: i32, %arg2: memref<1x128x128xf32, #tpu.memory_space<vmem>>, %arg3: memref<128x384xf32, #tpu.memory_space<vmem>>, %arg4: memref<1x128x128xf32, #tpu.memory_space<vmem>>, %arg5: memref<1x128x128xf32, #tpu.memory_space<vmem>>, %arg6: memref<1x128x128xf32, #tpu.memory_space<vmem>>) attributes {dimension_semantics = [#tpu.dimension_semantics<parallel>, #tpu.dimension_semantics<parallel>], iteration_bounds = array<i64: 2, 1>, scalar_prefetch = 0 : i64, scratch_operands = 0 : i64, tpu.core_type = #tpu.core_type<tc>, window_params = [{transform_indices = @transform_0, window_bounds = array<i64: 1, 128, 128>}, {pipeline_mode = #tpu.pipeline_mode<synchronous>, transform_indices = @transform_1, window_bounds = array<i64: 128, 384>}, {transform_indices = @transform_2, window_bounds = array<i64: 1, 128, 128>}, {transform_indices = @transform_3, window_bounds = array<i64: 1, 128, 128>}, {transform_indices = @transform_4, window_bounds = array<i64: 1, 128, 128>}]} {
    %c0 = arith.constant 0 : index
    %c0_0 = arith.constant 0 : index
    %c0_1 = arith.constant 0 : index
    %0 = vector.load %arg2[%c0, %c0_0, %c0_1] : memref<1x128x128xf32, #tpu.memory_space<vmem>>, vector<1x128x128xf32>
    %1 = vector.shape_cast %0 : vector<1x128x128xf32> to vector<128x128xf32>
    %c0_2 = arith.constant 0 : index
    %c0_3 = arith.constant 0 : index
    %2 = vector.load %arg3[%c0_2, %c0_3] : memref<128x384xf32, #tpu.memory_space<vmem>>, vector<128x384xf32>
    %cst = arith.constant dense<0.000000e+00> : vector<128x384xf32>
    %3 = tpu.matmul %1, %2, %cst {dimension_numbers = #tpu.dot_dimension_numbers<[1], [0], [0], [1], [0, 0, 1, 1], [], []>} : vector<128x128xf32>, vector<128x384xf32>, vector<128x384xf32> -> vector<128x384xf32>
    %4 = vector.extract_strided_slice %3 {offsets = [0, 0], sizes = [128, 128], strides = [1, 1]} : vector<128x384xf32> to vector<128x128xf32>
    %c0_4 = arith.constant 0 : index
    %c0_5 = arith.constant 0 : index
    %c0_6 = arith.constant 0 : index
    %5 = vector.load %arg4[%c0_4, %c0_5, %c0_6] : memref<1x128x128xf32, #tpu.memory_space<vmem>>, vector<1x128x128xf32>
    %6 = vector.shape_cast %5 : vector<1x128x128xf32> to vector<128x128xf32>
    %7 = vector.shape_cast %4 : vector<128x128xf32> to vector<1x128x128xf32>
    tpu.vector_store %arg4[%c0_4, %c0_5, %c0_6], %7 {strides = array<i32>} : memref<1x128x128xf32, #tpu.memory_space<vmem>>, vector<1x128x128xf32>,
    %8 = vector.extract_strided_slice %3 {offsets = [0, 128], sizes = [128, 128], strides = [1, 1]} : vector<128x384xf32> to vector<128x128xf32>
    %c0_7 = arith.constant 0 : index
    %c0_8 = arith.constant 0 : index
    %c0_9 = arith.constant 0 : index
    %9 = vector.load %arg5[%c0_7, %c0_8, %c0_9] : memref<1x128x128xf32, #tpu.memory_space<vmem>>, vector<1x128x128xf32>
    %10 = vector.shape_cast %9 : vector<1x128x128xf32> to vector<128x128xf32>
    %11 = vector.shape_cast %8 : vector<128x128xf32> to vector<1x128x128xf32>
    tpu.vector_store %arg5[%c0_7, %c0_8, %c0_9], %11 {strides = array<i32>} : memref<1x128x128xf32, #tpu.memory_space<vmem>>, vector<1x128x128xf32>,
    %12 = vector.extract_strided_slice %3 {offsets = [0, 256], sizes = [128, 128], strides = [1, 1]} : vector<128x384xf32> to vector<128x128xf32>
    %c0_10 = arith.constant 0 : index
    %c0_11 = arith.constant 0 : index
    %c0_12 = arith.constant 0 : index
    %13 = vector.load %arg6[%c0_10, %c0_11, %c0_12] : memref<1x128x128xf32, #tpu.memory_space<vmem>>, vector<1x128x128xf32>
    %14 = vector.shape_cast %13 : vector<1x128x128xf32> to vector<128x128xf32>
    %15 = vector.shape_cast %12 : vector<128x128xf32> to vector<1x128x128xf32>
    tpu.vector_store %arg6[%c0_10, %c0_11, %c0_12], %15 {strides = array<i32>} : memref<1x128x128xf32, #tpu.memory_space<vmem>>, vector<1x128x128xf32>,
    return
  }
  func.func @transform_0(%arg0: i32, %arg1: i32) -> (i32, i32, i32) {
    %c0_i32 = arith.constant 0 : i32
    %c0_i32_0 = arith.constant 0 : i32
    return %arg0, %arg1, %c0_i32 : i32, i32, i32
  }
  func.func @transform_1(%arg0: i32, %arg1: i32) -> (i32, i32) {
    %c0_i32 = arith.constant 0 : i32
    %c0_i32_0 = arith.constant 0 : i32
    %c0_i32_1 = arith.constant 0 : i32
    return %c0_i32, %c0_i32_0 : i32, i32
  }
  func.func @transform_2(%arg0: i32, %arg1: i32) -> (i32, i32, i32) {
    %c0_i32 = arith.constant 0 : i32
    %c0_i32_0 = arith.constant 0 : i32
    return %arg0, %arg1, %c0_i32 : i32, i32, i32
  }
  func.func @transform_3(%arg0: i32, %arg1: i32) -> (i32, i32, i32) {
    %c0_i32 = arith.constant 0 : i32
    %c0_i32_0 = arith.constant 0 : i32
    return %arg0, %arg1, %c0_i32 : i32, i32, i32
  }
  func.func @transform_4(%arg0: i32, %arg1: i32) -> (i32, i32, i32) {
    %c0_i32 = arith.constant 0 : i32
    %c0_i32_0 = arith.constant 0 : i32
    return %arg0, %arg1, %c0_i32 : i32, i32, i32
  }
}

</mosaic_0001>

<bundles_post_ra>
// kernel: tpu_custom_call.1
= control target key start
LH: loop header
LB: loop body
LE: loop exit
PB: predicated region body
PF: predicated region fallthrough
CT: control target
= control target key end

     0   :  { %s1648_s0 = inlined_call_operand.hbm [shape: f32[2,128,128], index: 0, kind: input, shape index: {}]   ;;  %s1649_s1 = inlined_call_operand.hbm [shape: f32[128,384], index: 1, kind: input, shape index: {}]   ;;  %s1650_s2 = inlined_call_operand.hbm [shape: f32[2,128,128], index: 2, kind: output, shape index: {0}]   ;;  %s1651_s3 = inlined_call_operand.hbm [shape: f32[2,128,128], index: 3, kind: output, shape index: {1}]   ;;  %s1652_s4 = inlined_call_operand.hbm [shape: f32[2,128,128], index: 4, kind: output, shape index: {2}]  }
   0x1   :  { %1655 = sst [smem:[#allocation16_spill]] %s1649_s1 }
   0x2   :  { %10 = vsyncpa [#allocation3], 0 }
   0x3   :  { %12 = vsyncpa [#allocation3 + $0x1], 0 }
   0x4   :  { %13 = vsyncpa [#allocation6], 0 }
   0x5   :  { %14 = vsyncpa [#allocation4], 0 }
   0x6   :  { %16 = vsyncpa [#allocation4 + $0x1], 0 }
   0x7   :  { %17 = vsyncpa [#allocation9], 0 }
   0x8   :  { %19 = vsyncpa [#allocation9 + $0x1], 0  ;;  %s1224_s15 = smov 0   ;;  %s1226_s16 = smov 0  }
   0x9   :  { %s1228_s17 = smov 0   ;;  %s1230_s18 = smov 0  }
   0xa   :  { %s1232_s19 = smov 0   ;;  %s1234_s20 = smov 0  }
   0xb LB: > { %s1255_s21 = sadd.s32 4294967295, %s1190_s20   ;;  %s1653_s22 = sadd.s32 4294967294, %s1190_s20   ;;  %s1190_s20 = sphi %s1234_s20, %s25_s20   ;;  %s1186_s19 = sphi %s1232_s19, %s1669_s19   ;;  %s1182_s18 = sphi %s1230_s18, %s1668_s18   ;;  %s1178_s17 = sphi %s1228_s17, %s1667_s17   ;;  %s1174_s16 = sphi %s1226_s16, %s1666_s16   ;;  %s1170_s15 = sphi %s1224_s15, %s1665_s15  }
   0xc   : > { %p59_p0 = scmp.ne.s32.totalorder %s1174_s16, %s1170_s15  ;;  %p60_p1 = scmp.eq.s32.totalorder %s1255_s21, 0 }
   0xd   : > { %p106_p2 = scmp.eq.s32.totalorder %s1255_s21, 1  ;;  %p112_p3 = scmp.eq.s32.totalorder %s1653_s22, 1 }
   0xe   : > { %p1266_p4 = por %p60_p1, %p59_p0  ;;  %p820_p5 = scmp.ge.s32.totalorder %s1190_s20, 1 }
   0xf   : > { %p1271_p6 = por %p112_p3, %p59_p0  ;;  %p175_p7 = scmp.lt.s32.totalorder %s1190_s20, 3 }
  0x10   : > { %s1658_s1 = sld [smem:[#allocation16_spill]]  ;;  %s1192_s29 = smov [#allocation5]  }
  0x11   : > { %p1279_p8 = pnand %p820_p5, %p175_p7  ;;  %s188_s30 = sshll.u32 %s1192_s29, 4  ;;  %s189_s30 = int_to_ptr.vmem [resolvable:$true] %s188_s30 }
  0x12   : > { %p822_p11 = scmp.ge.s32.totalorder %s1190_s20, 2  ;;  %s1193_s5 = smov 384  }
  0x13   : > { %p907_p9 = pneg %p1279_p8  ;;  %s1194_s6 = smov 24  }
  0x14   : > { %s37_s7 = sadd.s32 1, %s1186_s19  ;;  %s46_s8 = sadd.s32 1, %s1178_s17 }
  0x15   : > { %p908_p10 = pnand %p907_p9, %p60_p1  ;;  %p39_p12 = scmp.ge.s32.totalorder %s37_s7, 2 }
  0x16   : > { %s186_s27 = sshll.u32 %s1658_s1, 4  ;;  %p53_p13 = scmp.ne.s32.totalorder %s1178_s17, %s1174_s16  ;;  %s187_s27 = int_to_ptr.hbm [resolvable:$true] %s186_s27 }
  0x17   : > { %910 = dma.hbm_to_vmem [thread:$0]  (!%p908_p10), %s187_s27, 6144, %s189_s30, [#allocation6], %s1193_s5, %s1193_s5, %s1194_s6  }
  0x18   : > { %p54_p0 = scmp.eq.s32.totalorder %s1190_s20, 0  ;;  %s1671_s7 = smov (%p39_p12, %s37_s7), 0 }
  0x19   : > { %1660 = sst [smem:[#allocation15_spill]] %s1671_s7  ;;  %p1301_p5 = por %p106_p2, %p53_p13 }
  0x1a   : > { %p1295_p3 = por %p54_p0, %p53_p13  ;;  %s41_s11 = ssub.s32 %s1186_s19, %s1671_s7 }
  0x1b   : > { %p926_p7 = scmp.lt.s32.totalorder %s1190_s20, 2  ;;  %p44_p9 = scmp.eq.s32.totalorder %s41_s11, 0 }
  0x1c   : > { %s202_s12 = sand.u32 1, %s1178_s17   ;;  %s843_s25 = sshll.u32 %s1186_s19, 7 }
  0x1d   : > { %s823_s13 = sshll.u32 %s202_s12, 7  ;;  %s213_s29 = scalar_lea.hbm %s1648_s0, %s843_s25 }
  0x1e   : > { %s1310_s14 = scalar_select %p44_p9, %s1178_s17, %s46_s8  }
  0x1f   : > { %s206_s30 = scalar_lea.vmem [#allocation2], %s823_s13  ;;  %s214_s6 = sshll.u32 %s213_s29, 4  ;;  %s215_s6 = int_to_ptr.hbm [resolvable:$true] %s214_s6 }
  0x20   : > { %s216_s5 = sshll.u32 %s206_s30, 4  ;;  %p912_p2 = pnand %p926_p7, %p1295_p3  ;;  %s217_s5 = int_to_ptr.vmem [resolvable:$true] %s216_s5 }
  0x21   : > { %s203_s22 = scalar_lea.sflag [#allocation3], %s202_s12  ;;  %s1195_s1 = smov 128  }
  0x22   : > { %s1196_s7 = smov 8   ;;  %228 = sbr.rel (%p1279_p8) target bundleno = 329 (0x149), region = 28 }
  0x23   : > { %914 = dma.hbm_to_vmem [thread:$0]  (!%p912_p2), %s215_s6, 2048, %s217_s5, %s203_s22, %s1195_s1, %s1195_s1, %s1196_s7  }
  0x24   : > { %s1321_s8 = sand.u32 (!%p1279_p8), 1, %s1174_s16  }
  0x25   : > { %s1324_s11 = sshll.u32 (!%p1279_p8), %s1321_s8, 7  ;;  %s231_s13 = scalar_lea.sflag (!%p1279_p8), [#allocation3], %s1321_s8 }
  0x26   : > { %s1328_s25 = scalar_lea.vmem (!%p1279_p8), [#allocation2], %s1324_s11 }
  0x27   : > { %1153 = dma.done.wait (%p1266_p4), %s231_s13, 2048  }
  0x28   : > { %1155 = vsyncadd (%p1266_p4), %s231_s13, 4294965248 }
  0x29   : > { %1157 = dma.done.wait (%p60_p1), [#allocation6], 6144  }
  0x2a   : > { %1159 = vsyncadd (%p60_p1), [#allocation6], 4294961152  ;;  %v340_v0 = vld [vmem:[#allocation5 + $0x168] sm:$0xff]  ;;  %v1338_v1 = vld [vmem:[#allocation5 + $0x178] sm:$0xff]  ;;  %s1483_s1 = scalar_lea.vmem [#allocation8], %s1324_s11  ;;  %s1487_s22 = scalar_lea.vmem [#allocation7], %s1324_s11 }
  0x2b   : > { %v337_v2 = vld [vmem:[#allocation5 + $0x150] sm:$0xff]  ;;  %847 = vmatpush.msra.mxu3 %v340_v0  ;;  %473 = vmatpush.msra.mxu2 %v1338_v1  ;;  %v1341_v3 = vld [vmem:[#allocation5 + $0x160] sm:$0xff]  ;;  %v334_v4 = vld [vmem:[#allocation5 + $0x138] sm:$0xff]  ;;  %s1492_s23 = scalar_lea.vmem [#allocation10], %s1324_s11  ;;  %s844_s28 = sshll.u32 %s1182_s18, 7 }
  0x2c   : > { %v1343_v5 = vld [vmem:[#allocation5 + $0x148] sm:$0xff]  ;;  %v1345_v6 = vld [vmem:[#allocation5 + $0x170] sm:$0xff]  ;;  %343 = vmatpush.msra.mxu0 %v340_v0  ;;  %v1348_v7 = vld [vmem:[#allocation5 + $0x158] sm:$0xff]  ;;  %s591_s7 = sand.u32 1, %s1255_s21   ;;  %s629_s26 = scalar_lea.hbm %s1651_s3, %s844_s28 }
  0x2d   : > { %848 = vmatpush.msra.mxu3 %v337_v2  ;;  %474 = vmatpush.msra.mxu2 %v1341_v3  ;;  %v331_v8 = vld [vmem:[#allocation5 + $0x120] sm:$0xff]  ;;  %v1351_v9 = vld [vmem:[#allocation5 + $0x130] sm:$0xff]  ;;  %v328_v11 = vld [vmem:[#allocation5 + $0x108] sm:$0xff]  ;;  %s630_s27 = sshll.u32 %s1483_s1, 4  ;;  %s610_s18 = scalar_lea.hbm %s1650_s2, %s844_s28  ;;  %s1547_s27 = int_to_ptr.vmem [resolvable:$true] %s630_s27 }
  0x2e   : > { %408 = vmatpush.msra.mxu1 %v1345_v6  ;;  %344 = vmatpush.msra.mxu0 %v337_v2  ;;  %v1354_v10 = vld [vmem:[#allocation5 + $0x140] sm:$0xff]  ;;  %v1357_v12 = vld [vmem:[#allocation5 + $0x118] sm:$0xff]  ;;  %v1360_v13 = vld [vmem:[#allocation5 + $0x128] sm:$0xff]  ;;  %s648_s6 = scalar_lea.hbm %s1652_s4, %s844_s28  ;;  %s1549_s11 = sshll.u32 %s629_s26, 4  ;;  %s633_s11 = int_to_ptr.hbm [resolvable:$true] %s1549_s11 }
  0x2f   : > { %849 = vmatpush.msra.mxu3 %v334_v4  ;;  %475 = vmatpush.msra.mxu2 %v1343_v5  ;;  %v325_v14 = vld [vmem:[#allocation5 + $0xf0] sm:$0xff]  ;;  %v1363_v15 = vld [vmem:[#allocation5 + $0x100] sm:$0xff]  ;;  %v322_v17 = vld [vmem:[#allocation5 + $0xd8] sm:$0xff]  ;;  %s611_s13 = sshll.u32 %s1487_s22, 4  ;;  %s1555_s9 = sshll.u32 %s648_s6, 4  ;;  %s1561_s13 = int_to_ptr.vmem [resolvable:$true] %s611_s13  ;;  %s652_s9 = int_to_ptr.hbm [resolvable:$true] %s1555_s9 }
  0x30   : > { %409 = vmatpush.msra.mxu1 %v1348_v7  ;;  %345 = vmatpush.msra.mxu0 %v334_v4  ;;  %v1366_v16 = vld [vmem:[#allocation5 + $0x110] sm:$0xff]  ;;  %v1369_v18 = vld [vmem:[#allocation5 + $0xe8] sm:$0xff]  ;;  %v1372_v19 = vld [vmem:[#allocation5 + $0xf8] sm:$0xff]  ;;  %s649_s12 = sshll.u32 %s1492_s23, 4  ;;  %s1568_s28 = scalar_lea.sflag [#allocation9], %s591_s7  ;;  %s1566_s12 = int_to_ptr.vmem [resolvable:$true] %s649_s12 }
  0x31   : > { %850 = vmatpush.msra.mxu3 %v331_v8  ;;  %476 = vmatpush.msra.mxu2 %v1351_v9  ;;  %v319_v20 = vld [vmem:[#allocation5 + $0xc0] sm:$0xff]  ;;  %v1375_v21 = vld [vmem:[#allocation5 + $0xd0] sm:$0xff]  ;;  %v316_v23 = vld [vmem:[#allocation5 + $0xa8] sm:$0xff]  ;;  %s1064_s30 = scalar_lea.hbm %s1651_s3, 256 }
  0x32   : > { %410 = vmatpush.msra.mxu1 %v1354_v10  ;;  %346 = vmatpush.msra.mxu0 %v331_v8  ;;  %v1378_v22 = vld [vmem:[#allocation5 + $0xe0] sm:$0xff]  ;;  %v1381_v24 = vld [vmem:[#allocation5 + $0xb8] sm:$0xff]  ;;  %v1384_v25 = vld [vmem:[#allocation5 + $0xc8] sm:$0xff] }
  0x33   : > { %851 = vmatpush.msra.mxu3 %v328_v11  ;;  %477 = vmatpush.msra.mxu2 %v1357_v12  ;;  %v313_v26 = vld [vmem:[#allocation5 + $0x90] sm:$0xff]  ;;  %v1387_v27 = vld [vmem:[#allocation5 + $0xa0] sm:$0xff]  ;;  %v310_v29 = vld [vmem:[#allocation5 + $0x78] sm:$0xff] }
  0x34   : > { %411 = vmatpush.msra.mxu1 %v1360_v13  ;;  %347 = vmatpush.msra.mxu0 %v328_v11  ;;  %v1390_v28 = vld [vmem:[#allocation5 + $0xb0] sm:$0xff]  ;;  %v1393_v30 = vld [vmem:[#allocation5 + $0x88] sm:$0xff]  ;;  %v1396_v31 = vld [vmem:[#allocation5 + $0x98] sm:$0xff] }
  0x35   : > { %852 = vmatpush.msra.mxu3 %v325_v14  ;;  %478 = vmatpush.msra.mxu2 %v1363_v15  ;;  %v307_v32 = vld [vmem:[#allocation5 + $0x60] sm:$0xff]  ;;  %v1399_v33 = vld [vmem:[#allocation5 + $0x70] sm:$0xff]  ;;  %v304_v35 = vld [vmem:[#allocation5 + $0x48] sm:$0xff] }
  0x36   : > { %412 = vmatpush.msra.mxu1 %v1366_v16  ;;  %348 = vmatpush.msra.mxu0 %v325_v14  ;;  %v1402_v34 = vld [vmem:[#allocation5 + $0x80] sm:$0xff]  ;;  %v1405_v36 = vld [vmem:[#allocation5 + $0x58] sm:$0xff]  ;;  %v308_v37 = vld [vmem:[#allocation5 + $0x68] sm:$0xff] }
  0x37   : > { %853 = vmatpush.msra.mxu3 %v322_v17  ;;  %479 = vmatpush.msra.mxu2 %v1369_v18  ;;  %v301_v38 = vld [vmem:[#allocation5 + $0x30] sm:$0xff]  ;;  %v1409_v39 = vld [vmem:[#allocation5 + $0x40] sm:$0xff]  ;;  %v298_v41 = vld [vmem:[#allocation5 + $0x18] sm:$0xff] }
  0x38   : > { %413 = vmatpush.msra.mxu1 %v1372_v19  ;;  %349 = vmatpush.msra.mxu0 %v322_v17  ;;  %v305_v40 = vld [vmem:[#allocation5 + $0x50] sm:$0xff]  ;;  %v1412_v42 = vld [vmem:[#allocation5 + $0x28] sm:$0xff]  ;;  %v302_v43 = vld [vmem:[#allocation5 + $0x38] sm:$0xff] }
  0x39   : > { %854 = vmatpush.msra.mxu3 %v319_v20  ;;  %480 = vmatpush.msra.mxu2 %v1375_v21  ;;  %v295_v44 = vld [vmem:[#allocation5] sm:$0xff]  ;;  %v1415_v45 = vld [vmem:[#allocation5 + $0x10] sm:$0xff]  ;;  %v296_v49 = vld [vmem:[#allocation5 + $0x8] sm:$0xff] }
  0x3a   : > { %414 = vmatpush.msra.mxu1 %v1378_v22  ;;  %350 = vmatpush.msra.mxu0 %v319_v20  ;;  %v1419_v46 = vld [vmem:[%s1328_s25 + $0x60] sm:$0xff]  ;;  %v1428_v50 = vld [vmem:[%s1328_s25 + $0x68] sm:$0xff]  ;;  %v1437_v52 = vld [vmem:[%s1328_s25 + $0x70] sm:$0xff] }
  0x3b   : > { %855 = vmatpush.msra.mxu3 %v316_v23  ;;  %481 = vmatpush.msra.mxu2 %v1381_v24  ;;  %v279_v47 = vld [vmem:[%s1328_s25] sm:$0xff]  ;;  %v280_v51 = vld [vmem:[%s1328_s25 + $0x8] sm:$0xff]  ;;  %v281_v53 = vld [vmem:[%s1328_s25 + $0x10] sm:$0xff] }
  0x3c   : > { %415 = vmatpush.msra.mxu1 %v1384_v25  ;;  %351 = vmatpush.msra.mxu0 %v316_v23  ;;  %v299_v48 = vld [vmem:[#allocation5 + $0x20] sm:$0xff]  ;;  %v1446_v54 = vld [vmem:[%s1328_s25 + $0x78] sm:$0xff]  ;;  %v284_v57 = vld [vmem:[%s1328_s25 + $0x28] sm:$0xff] }
  0x3d   : > { %856 = vmatpush.msra.mxu3 %v313_v26  ;;  %482 = vmatpush.msra.mxu2 %v1387_v27  ;;  %v282_v55 = vld [vmem:[%s1328_s25 + $0x18] sm:$0xff]  ;;  %v283_v56 = vld [vmem:[%s1328_s25 + $0x20] sm:$0xff]  ;;  %v285_v58 = vld [vmem:[%s1328_s25 + $0x30] sm:$0xff] }
  0x3e   : > { %416 = vmatpush.msra.mxu1 %v1390_v28  ;;  %352 = vmatpush.msra.mxu0 %v313_v26  ;;  %v286_v59 = vld [vmem:[%s1328_s25 + $0x38] sm:$0xff]  ;;  %v287_v60 = vld [vmem:[%s1328_s25 + $0x40] sm:$0xff]  ;;  %v288_v61 = vld [vmem:[%s1328_s25 + $0x48] sm:$0xff] }
  0x3f   : > { %857 = vmatpush.msra.mxu3 %v310_v29  ;;  %483 = vmatpush.msra.mxu2 %v1393_v30  ;;  %v289_v62 = vld [vmem:[%s1328_s25 + $0x50] sm:$0xff]  ;;  %v290_v63 = vld [vmem:[%s1328_s25 + $0x58] sm:$0xff]  ;;  %s1552_s25 = sshll.u32 %s610_s18, 4  ;;  %s614_s25 = int_to_ptr.hbm [resolvable:$true] %s1552_s25 }
  0x40   : > { %417 = vmatpush.msra.mxu1 %v1396_v31  ;;  %353 = vmatpush.msra.mxu0 %v310_v29 }
  0x41   : > { %858 = vmatpush.msra.mxu3 %v307_v32  ;;  %484 = vmatpush.msra.mxu2 %v1399_v33 }
  0x42   : > { %418 = vmatpush.msra.mxu1 %v1402_v34  ;;  %354 = vmatpush.msra.mxu0 %v307_v32 }
  0x43   : > { %859 = vmatpush.msra.mxu3 %v304_v35  ;;  %485 = vmatpush.msra.mxu2 %v1405_v36 }
  0x44   : > { %419 = vmatpush.msra.mxu1 %v308_v37  ;;  %355 = vmatpush.msra.mxu0 %v304_v35 }
  0x45   : > { %860 = vmatpush.msra.mxu3 %v301_v38  ;;  %486 = vmatpush.msra.mxu2 %v1409_v39 }
  0x46   : > { %420 = vmatpush.msra.mxu1 %v305_v40  ;;  %356 = vmatpush.msra.mxu0 %v301_v38 }
  0x47   : > { %861 = vmatpush.msra.mxu3 %v298_v41  ;;  %487 = vmatpush.msra.mxu2 %v1412_v42 }
  0x48   : > { %421 = vmatpush.msra.mxu1 %v302_v43  ;;  %357 = vmatpush.msra.mxu0 %v298_v41 }
  0x49   : > { %862 = vmatpush.msra.mxu3 %v295_v44  ;;  %488 = vmatpush.msra.mxu2 %v1415_v45 }
  0x4a   : > { %395 = vmatmul.f32.vlgmr.msra.gmra.mxu3 %v1419_v46  ;;  %489 = vmatmul.f32.vlgmr.msra.gmra.mxu2 %v279_v47 }
  0x4b   : > { %863 = vmatpush.msrb.mxu3 %v1345_v6  ;;  %422 = vmatpush.msra.mxu1 %v299_v48 }
  0x4c   : > { %358 = vmatpush.msra.mxu0 %v295_v44 }
  0x4d   : > { %864 = vmatpush.msrb.mxu3 %v1348_v7  ;;  %423 = vmatpush.msra.mxu1 %v296_v49 }
  0x4e   : > { %424 = vmatmul.f32.vlgmr.msra.gmra.mxu1 %v279_v47  ;;  %359 = vmatmul.f32.vlgmr.msra.gmra.mxu0 %v279_v47 }
  0x4f   : > { %865 = vmatpush.msrb.mxu3 %v1354_v10 }
  0x51   : > { %866 = vmatpush.msrb.mxu3 %v1360_v13 }
  0x52   : > { %398 = vmatmul.f32.gmra.mxu3 %v1428_v50  ;;  %492 = vmatmul.f32.gmra.mxu2 %v280_v51 }
  0x53   : > { %867 = vmatpush.msrb.mxu3 %v1366_v16 }
  0x55   : > { %868 = vmatpush.msrb.mxu3 %v1372_v19 }
  0x56   : > { %427 = vmatmul.f32.gmra.mxu1 %v280_v51  ;;  %362 = vmatmul.f32.gmra.mxu0 %v280_v51 }
  0x57   : > { %869 = vmatpush.msrb.mxu3 %v1378_v22 }
  0x59   : > { %870 = vmatpush.msrb.mxu3 %v1384_v25 }
  0x5a   : > { %401 = vmatmul.f32.gmra.mxu3 %v1437_v52  ;;  %495 = vmatmul.f32.gmra.mxu2 %v281_v53 }
  0x5b   : > { %871 = vmatpush.msrb.mxu3 %v1390_v28 }
  0x5d   : > { %872 = vmatpush.msrb.mxu3 %v1396_v31 }
  0x5e   : > { %430 = vmatmul.f32.gmra.mxu1 %v281_v53  ;;  %365 = vmatmul.f32.gmra.mxu0 %v281_v53 }
  0x5f   : > { %873 = vmatpush.msrb.mxu3 %v1402_v34 }
  0x61   : > { %874 = vmatpush.msrb.mxu3 %v308_v37 }
  0x62   : > { %404 = vmatmul.f32.gmra.mxu3 %v1446_v54  ;;  %498 = vmatmul.f32.gmra.mxu2 %v282_v55 }
  0x63   : > { %875 = vmatpush.msrb.mxu3 %v305_v40 }
  0x65   : > { %876 = vmatpush.msrb.mxu3 %v302_v43 }
  0x66   : > { %433 = vmatmul.f32.gmra.mxu1 %v282_v55  ;;  %368 = vmatmul.f32.gmra.mxu0 %v282_v55 }
  0x67   : > { %877 = vmatpush.msrb.mxu3 %v299_v48 }
  0x69   : > { %878 = vmatpush.msrb.mxu3 %v296_v49 }
  0x6a   : > { %460 = vmatmul.f32.vlgmr.msrb.gmra.mxu3 %v1419_v46  ;;  %501 = vmatmul.f32.gmra.mxu2 %v283_v56 }
  0x6b   : > { %879 = vmatpush.msra.mxu3 %v1338_v1 }
  0x6d   : > { %880 = vmatpush.msra.mxu3 %v1341_v3 }
  0x6e   : > { %436 = vmatmul.f32.gmra.mxu1 %v283_v56  ;;  %371 = vmatmul.f32.gmra.mxu0 %v283_v56 }
  0x6f   : > { %881 = vmatpush.msra.mxu3 %v1343_v5 }
  0x71   : > { %882 = vmatpush.msra.mxu3 %v1351_v9 }
  0x72   : > { %463 = vmatmul.f32.gmra.mxu3 %v1428_v50  ;;  %504 = vmatmul.f32.gmra.mxu2 %v284_v57 }
  0x73   : > { %883 = vmatpush.msra.mxu3 %v1357_v12 }
  0x75   : > { %884 = vmatpush.msra.mxu3 %v1363_v15 }
  0x76   : > { %439 = vmatmul.f32.gmra.mxu1 %v284_v57  ;;  %374 = vmatmul.f32.gmra.mxu0 %v284_v57 }
  0x77   : > { %885 = vmatpush.msra.mxu3 %v1369_v18 }
  0x79   : > { %886 = vmatpush.msra.mxu3 %v1375_v21 }
  0x7a   : > { %466 = vmatmul.f32.gmra.mxu3 %v1437_v52  ;;  %507 = vmatmul.f32.gmra.mxu2 %v285_v58 }
  0x7b   : > { %887 = vmatpush.msra.mxu3 %v1381_v24 }
  0x7d   : > { %888 = vmatpush.msra.mxu3 %v1387_v27 }
  0x7e   : > { %442 = vmatmul.f32.gmra.mxu1 %v285_v58  ;;  %377 = vmatmul.f32.gmra.mxu0 %v285_v58 }
  0x7f   : > { %889 = vmatpush.msra.mxu3 %v1393_v30 }
  0x81   : > { %890 = vmatpush.msra.mxu3 %v1399_v33 }
  0x82   : > { %469 = vmatmul.f32.gmra.mxu3 %v1446_v54  ;;  %510 = vmatmul.f32.gmra.mxu2 %v286_v59 }
  0x83   : > { %891 = vmatpush.msra.mxu3 %v1405_v36 }
  0x85   : > { %892 = vmatpush.msra.mxu3 %v1409_v39 }
  0x86   : > { %445 = vmatmul.f32.gmra.mxu1 %v286_v59  ;;  %380 = vmatmul.f32.gmra.mxu0 %v286_v59 }
  0x87   : > { %893 = vmatpush.msra.mxu3 %v1412_v42 }
  0x89   : > { %894 = vmatpush.msra.mxu3 %v1415_v45 }
  0x8a   : > { %513 = vmatmul.f32.gmra.mxu2 %v287_v60  ;;  %525 = vmatmul.f32.vlgmr.msra.gmra.mxu3 %v1419_v46 }
  0x8e   : > { %448 = vmatmul.f32.gmra.mxu1 %v287_v60  ;;  %383 = vmatmul.f32.gmra.mxu0 %v287_v60 }
  0x92   : > { %516 = vmatmul.f32.gmra.mxu2 %v288_v61  ;;  %528 = vmatmul.f32.gmra.mxu3 %v1428_v50 }
  0x96   : > { %451 = vmatmul.f32.gmra.mxu1 %v288_v61  ;;  %386 = vmatmul.f32.gmra.mxu0 %v288_v61 }
  0x9a   : > { %519 = vmatmul.f32.gmra.mxu2 %v289_v62  ;;  %531 = vmatmul.f32.gmra.mxu3 %v1437_v52 }
  0x9e   : > { %454 = vmatmul.f32.gmra.mxu1 %v289_v62  ;;  %389 = vmatmul.f32.gmra.mxu0 %v289_v62 }
  0xa2   : > { %522 = vmatmul.f32.gmra.mxu2 %v290_v63  ;;  %534 = vmatmul.f32.gmra.mxu3 %v1446_v54 }
  0xa6   : > { %457 = vmatmul.f32.gmra.mxu1 %v290_v63  ;;  %392 = vmatmul.f32.gmra.mxu0 %v290_v63 }
  0xcb   : > { %v425_v0 = vpop.f32.mrf.mxu1  ;;  %v360_v1 = vpop.f32.mrf.mxu0 }
  0xcc   : > { %554 = vst [vmem:[%s1483_s1] sm:$0xff] %v425_v0 }
  0xcd   : > { %538 = vst [vmem:[%s1487_s22] sm:$0xff] %v360_v1  ;;  %v396_v2 = vpop.f32.mrf.mxu3  ;;  %v490_v3 = vpop.f32.mrf.mxu2 }
  0xce   : > { %550 = vst [vmem:[%s1487_s22 + $0x60] sm:$0xff] %v396_v2 }
  0xcf   : > { %570 = vst [vmem:[%s1492_s23] sm:$0xff] %v490_v3 }
  0xd3   : > { %v428_v4 = vpop.f32.mrf.mxu1  ;;  %v363_v5 = vpop.f32.mrf.mxu0 }
  0xd4   : > { %555 = vst [vmem:[%s1483_s1 + $0x8] sm:$0xff] %v428_v4 }
  0xd5   : > { %539 = vst [vmem:[%s1487_s22 + $0x8] sm:$0xff] %v363_v5  ;;  %v399_v6 = vpop.f32.mrf.mxu3  ;;  %v493_v7 = vpop.f32.mrf.mxu2 }
  0xd6   : > { %551 = vst [vmem:[%s1487_s22 + $0x68] sm:$0xff] %v399_v6 }
  0xd7   : > { %571 = vst [vmem:[%s1492_s23 + $0x8] sm:$0xff] %v493_v7 }
  0xdb   : > { %v431_v8 = vpop.f32.mrf.mxu1  ;;  %v366_v9 = vpop.f32.mrf.mxu0 }
  0xdc   : > { %556 = vst [vmem:[%s1483_s1 + $0x10] sm:$0xff] %v431_v8 }
  0xdd   : > { %540 = vst [vmem:[%s1487_s22 + $0x10] sm:$0xff] %v366_v9  ;;  %v402_v10 = vpop.f32.mrf.mxu3  ;;  %v496_v11 = vpop.f32.mrf.mxu2 }
  0xde   : > { %552 = vst [vmem:[%s1487_s22 + $0x70] sm:$0xff] %v402_v10 }
  0xdf   : > { %572 = vst [vmem:[%s1492_s23 + $0x10] sm:$0xff] %v496_v11 }
  0xe3   : > { %v434_v12 = vpop.f32.mrf.mxu1  ;;  %v369_v13 = vpop.f32.mrf.mxu0 }
  0xe4   : > { %557 = vst [vmem:[%s1483_s1 + $0x18] sm:$0xff] %v434_v12 }
  0xe5   : > { %541 = vst [vmem:[%s1487_s22 + $0x18] sm:$0xff] %v369_v13  ;;  %v405_v14 = vpop.f32.mrf.mxu3  ;;  %v499_v15 = vpop.f32.mrf.mxu2 }
  0xe6   : > { %553 = vst [vmem:[%s1487_s22 + $0x78] sm:$0xff] %v405_v14 }
  0xe7   : > { %573 = vst [vmem:[%s1492_s23 + $0x18] sm:$0xff] %v499_v15 }
  0xeb   : > { %v437_v16 = vpop.f32.mrf.mxu1  ;;  %v372_v17 = vpop.f32.mrf.mxu0 }
  0xec   : > { %558 = vst [vmem:[%s1483_s1 + $0x20] sm:$0xff] %v437_v16 }
  0xed   : > { %542 = vst [vmem:[%s1487_s22 + $0x20] sm:$0xff] %v372_v17  ;;  %v461_v18 = vpop.f32.mrf.mxu3  ;;  %v502_v19 = vpop.f32.mrf.mxu2 }
  0xee   : > { %566 = vst [vmem:[%s1483_s1 + $0x60] sm:$0xff] %v461_v18 }
  0xef   : > { %574 = vst [vmem:[%s1492_s23 + $0x20] sm:$0xff] %v502_v19 }
  0xf3   : > { %v440_v20 = vpop.f32.mrf.mxu1  ;;  %v375_v21 = vpop.f32.mrf.mxu0 }
  0xf4   : > { %559 = vst [vmem:[%s1483_s1 + $0x28] sm:$0xff] %v440_v20 }
  0xf5   : > { %543 = vst [vmem:[%s1487_s22 + $0x28] sm:$0xff] %v375_v21  ;;  %v464_v22 = vpop.f32.mrf.mxu3  ;;  %v505_v23 = vpop.f32.mrf.mxu2 }
  0xf6   : > { %567 = vst [vmem:[%s1483_s1 + $0x68] sm:$0xff] %v464_v22 }
  0xf7   : > { %575 = vst [vmem:[%s1492_s23 + $0x28] sm:$0xff] %v505_v23 }
  0xfb   : > { %v443_v24 = vpop.f32.mrf.mxu1  ;;  %v378_v25 = vpop.f32.mrf.mxu0 }
  0xfc   : > { %560 = vst [vmem:[%s1483_s1 + $0x30] sm:$0xff] %v443_v24 }
  0xfd   : > { %544 = vst [vmem:[%s1487_s22 + $0x30] sm:$0xff] %v378_v25  ;;  %v467_v26 = vpop.f32.mrf.mxu3  ;;  %v508_v27 = vpop.f32.mrf.mxu2 }
  0xfe   : > { %568 = vst [vmem:[%s1483_s1 + $0x70] sm:$0xff] %v467_v26 }
  0xff   : > { %576 = vst [vmem:[%s1492_s23 + $0x30] sm:$0xff] %v508_v27 }
 0x103   : > { %v446_v28 = vpop.f32.mrf.mxu1  ;;  %v381_v29 = vpop.f32.mrf.mxu0 }
 0x104   : > { %561 = vst [vmem:[%s1483_s1 + $0x38] sm:$0xff] %v446_v28 }
 0x105   : > { %545 = vst [vmem:[%s1487_s22 + $0x38] sm:$0xff] %v381_v29  ;;  %v470_v30 = vpop.f32.mrf.mxu3  ;;  %v511_v31 = vpop.f32.mrf.mxu2 }
 0x106   : > { %569 = vst [vmem:[%s1483_s1 + $0x78] sm:$0xff] %v470_v30 }
 0x107   : > { %577 = vst [vmem:[%s1492_s23 + $0x38] sm:$0xff] %v511_v31 }
 0x10b   : > { %v449_v32 = vpop.f32.mrf.mxu1  ;;  %v384_v33 = vpop.f32.mrf.mxu0 }
 0x10c   : > { %562 = vst [vmem:[%s1483_s1 + $0x40] sm:$0xff] %v449_v32 }
 0x10d   : > { %546 = vst [vmem:[%s1487_s22 + $0x40] sm:$0xff] %v384_v33  ;;  %v514_v34 = vpop.f32.mrf.mxu2  ;;  %v526_v35 = vpop.f32.mrf.mxu3 }
 0x10e   : > { %578 = vst [vmem:[%s1492_s23 + $0x40] sm:$0xff] %v514_v34 }
 0x10f   : > { %582 = vst [vmem:[%s1492_s23 + $0x60] sm:$0xff] %v526_v35 }
 0x113   : > { %v452_v36 = vpop.f32.mrf.mxu1  ;;  %v387_v37 = vpop.f32.mrf.mxu0 }
 0x114   : > { %563 = vst [vmem:[%s1483_s1 + $0x48] sm:$0xff] %v452_v36 }
 0x115   : > { %547 = vst [vmem:[%s1487_s22 + $0x48] sm:$0xff] %v387_v37  ;;  %v517_v38 = vpop.f32.mrf.mxu2  ;;  %v529_v39 = vpop.f32.mrf.mxu3 }
 0x116   : > { %579 = vst [vmem:[%s1492_s23 + $0x48] sm:$0xff] %v517_v38 }
 0x117   : > { %583 = vst [vmem:[%s1492_s23 + $0x68] sm:$0xff] %v529_v39 }
 0x11b   : > { %v455_v40 = vpop.f32.mrf.mxu1  ;;  %v390_v41 = vpop.f32.mrf.mxu0 }
 0x11c   : > { %564 = vst [vmem:[%s1483_s1 + $0x50] sm:$0xff] %v455_v40 }
 0x11d   : > { %548 = vst [vmem:[%s1487_s22 + $0x50] sm:$0xff] %v390_v41  ;;  %v520_v42 = vpop.f32.mrf.mxu2  ;;  %v532_v43 = vpop.f32.mrf.mxu3 }
 0x11e   : > { %580 = vst [vmem:[%s1492_s23 + $0x50] sm:$0xff] %v520_v42 }
 0x11f   : > { %584 = vst [vmem:[%s1492_s23 + $0x70] sm:$0xff] %v532_v43 }
 0x123   : > { %v458_v44 = vpop.f32.mrf.mxu1  ;;  %v393_v45 = vpop.f32.mrf.mxu0 }
 0x124   : > { %565 = vst [vmem:[%s1483_s1 + $0x58] sm:$0xff] %v458_v44  ;;  %s1058_s1 = sshra.s32 %s633_s11, 4  ;;  %s1059_s1 = int_to_ptr.hbm [resolvable:$true] %s1058_s1 }
 0x125   : > { %549 = vst [vmem:[%s1487_s22 + $0x58] sm:$0xff] %v393_v45  ;;  %v523_v46 = vpop.f32.mrf.mxu2  ;;  %v535_v47 = vpop.f32.mrf.mxu3  ;;  %s1060_s26 = scalar_lea.hbm %s1059_s1, 128  ;;  %p1065_p10 = scmp.lt.s32.totalorder %s1059_s1, %s1651_s3 }
 0x126   : > { %581 = vst [vmem:[%s1492_s23 + $0x58] sm:$0xff] %v523_v46  ;;  %p1061_p1 = scmp.ne.s32.totalorder %s1059_s1, %s1060_s26  ;;  %p1066_p12 = scmp.lt.s32.totalorder %s1064_s30, %s1060_s26 }
 0x127   : > { %585 = vst [vmem:[%s1492_s23 + $0x78] sm:$0xff] %v535_v47 }
 0x128   : > { %p1062_p4 = pnand %p1061_p1, %p1301_p5  ;;  %p1067_p13 = por %p1066_p12, %p1065_p10 }
 0x12a   : > { %p1063_p8 = pneg %p1062_p4 }
 0x12c   : > { %p1068_p0 = pnand %p1067_p13, %p1063_p8 }
 0x12e   : > { %1071 = shalt.err (!%p1068_p0)
}
 0x12f   : > { %s1197_s23 = smov 128   ;;  %s1198_s7 = smov 8  }
 0x130   : > { %902 = dma.vmem_to_hbm [thread:$0]  (%p1301_p5), %s1547_s27, 2048, %s633_s11, %s1568_s28, %s1197_s23, %s1197_s23, %s1198_s7  }
 0x131   : > { %s587_s21 = scalar_lea.sflag [#allocation4], %s1321_s8  ;;  %s1086_s6 = sshra.s32 %s614_s25, 4  ;;  %s1087_s6 = int_to_ptr.hbm [resolvable:$true] %s1086_s6 }
 0x132   : > { %s1088_s1 = scalar_lea.hbm %s1087_s6, 128  ;;  %s1092_s29 = scalar_lea.hbm %s1650_s2, 256 }
 0x133   : > { %p1089_p3 = scmp.ne.s32.totalorder %s1087_s6, %s1088_s1  ;;  %p1093_p2 = scmp.lt.s32.totalorder %s1087_s6, %s1650_s2 }
 0x134   : > { %p1094_p1 = scmp.lt.s32.totalorder %s1092_s29, %s1088_s1 }
 0x135   : > { %p1090_p7 = pnand %p1089_p3, %p1301_p5 }
 0x136   : > { %p1095_p4 = por %p1094_p1, %p1093_p2 }
 0x137   : > { %p1091_p9 = pneg %p1090_p7 }
 0x139   : > { %p1096_p8 = pnand %p1095_p4, %p1091_p9 }
 0x13b   : > { %1099 = shalt.err (!%p1096_p8)
}
 0x13c   : > { %901 = dma.vmem_to_hbm [thread:$0]  (%p1301_p5), %s1561_s13, 2048, %s614_s25, %s587_s21, %s1197_s23, %s1197_s23, %s1198_s7  }
 0x13d   : > { %s1114_s8 = sshra.s32 %s652_s9, 4  ;;  %s1120_s6 = scalar_lea.hbm %s1652_s4, 256  ;;  %s1115_s8 = int_to_ptr.hbm [resolvable:$true] %s1114_s8 }
 0x13e   : > { %s1116_s27 = scalar_lea.hbm %s1115_s8, 128  ;;  %p1121_p0 = scmp.lt.s32.totalorder %s1115_s8, %s1652_s4 }
 0x13f   : > { %p1117_p10 = scmp.ne.s32.totalorder %s1115_s8, %s1116_s27  ;;  %p1122_p3 = scmp.lt.s32.totalorder %s1120_s6, %s1116_s27 }
 0x141   : > { %p1118_p12 = pnand %p1117_p10, %p1301_p5  ;;  %p1123_p7 = por %p1122_p3, %p1121_p0 }
 0x143   : > { %p1119_p13 = pneg %p1118_p12 }
 0x145   : > { %p1124_p9 = pnand %p1123_p7, %p1119_p13 }
 0x147   : > { %1127 = shalt.err (!%p1124_p9)
}
 0x148   : > { %903 = dma.vmem_to_hbm [thread:$0]  (%p1301_p5), %s1566_s12, 2048, %s652_s9, %s1568_s28, %s1197_s23, %s1197_s23, %s1198_s7  }
 0x149 PF: > { %s666_s13 = sand.u32 1, %s1170_s15   ;;  %p916_p2 = pnand %p822_p11, %p1271_p6 }
 0x14a   : > { %s667_s25 = scalar_lea.sflag [#allocation4], %s666_s13 }
 0x14b   : > { %p917_p1 = pneg %p916_p2 }
 0x14d   : > { %1161 = dma.done.wait (%p917_p1), %s667_s25, 2048  }
 0x14e   : > { %1163 = vsyncadd (%p917_p1), %s667_s25, 4294965248  ;;  %s1663_s10 = sadd.s32 4294967294, %s1190_s20  }
 0x14f   : > { %s676_s21 = sand.u32 1, %s1663_s10  }
 0x150   : > { %s677_s22 = scalar_lea.sflag [#allocation9], %s676_s21 }
 0x151   : > { %1165 = dma.done.wait (%p917_p1), %s677_s22, 4096  }
 0x152   : > { %1167 = vsyncadd (%p917_p1), %s677_s22, 4294963200  ;;  %s25_s20 = sadd.s32 1, %s1190_s20   ;;  %s1664_s24 = sld [smem:[#allocation15_spill]] }
 0x153   : > { %p22_p5 = scmp.ge.s32.totalorder %s25_s20, 4   ;;  %s1665_s15 = smov %s1174_s16 }
 0x154   : > { %s1666_s16 = smov %s1178_s17  ;;  %s1667_s17 = smov %s1310_s14 }
 0x155   : > { %s1668_s18 = smov %s1186_s19  ;;  %24 = sbr.rel (!%p22_p5) target bundleno = 11 (0xb), region = 109 }
 0x158   : > { %s1669_s19 = smov %s1664_s24 }
 0x15a   :  { %693 = vsyncpa [#allocation3], 1 }
 0x15b   :  { %695 = vsyncpa [#allocation3 + $0x1], 1 }
 0x15c   :  { %696 = vsyncpa [#allocation6], 1 }
 0x15d   :  { %697 = vsyncpa [#allocation4], 1 }
 0x15e   :  { %699 = vsyncpa [#allocation4 + $0x1], 1 }
 0x15f   :  { %700 = vsyncpa [#allocation9], 1 }
 0x160   :  { %702 = vsyncpa [#allocation9 + $0x1], 1 }

</bundles_post_ra>
